<compile_context>
chip_gen: v7x
topology: tpu7x:2x2x1
jax: 0.10.0
libtpu: 0.0.40
codegen_flags: <defaults>
</compile_context>

<pallas_src>
import functools
import math

import jax
import jax.numpy as jnp
from jax import lax
from jax.experimental import pallas as pl
from jax.experimental.pallas import tpu as pltpu


def _round_up(x, m):
    return ((x + m - 1) // m) * m


def _pick_tile(dim, tile, align):
    """Largest legal tile <= `tile` for this dim (full dim if it fits)."""
    if dim <= tile:
        return dim                      # block == full dim is always legal
    return max(align, (tile // align) * align)


def _make_kernel(act_fn, has_bias, use_scratch):
    """Kernel factory: one (tm, tn) output tile, accumulated over the K axis."""

    def kernel(*refs):
        x_ref, w_ref = refs[0], refs[1]
        idx = 2
        b_ref = None
        if has_bias:
            b_ref = refs[idx]
            idx += 1
        o_ref = refs[idx]
        idx += 1
        acc_ref = refs[idx] if use_scratch else o_ref   # f32 out -> accumulate in place

        k = pl.program_id(2)

        @pl.when(k == 0)
        def _():
            acc_ref[...] = jnp.zeros_like(acc_ref)

        # x tile: (tm, tk);  W.T tile: (tk, tn).  Standard MXU contraction,
        # f32 accumulation regardless of operand dtype.
        acc_ref[...] += lax.dot_general(
            x_ref[...], w_ref[...],
            dimension_numbers=(((1,), (0,)), ((), ())),
            preferred_element_type=jnp.float32,
        )

        if has_bias or (act_fn is not None) or use_scratch:
            @pl.when(k == pl.num_programs(2) - 1)
            def _():
                y = acc_ref[...].astype(jnp.float32)
                if has_bias:
                    y = y + b_ref[...].astype(jnp.float32)
                if act_fn is not None:
                    y = act_fn(y)
                o_ref[...] = y.astype(o_ref.dtype)

    return kernel


def mlp_layer(x, weight, bias=None, *, activation="relu", compute_dtype=None,
              tile_m=512, tile_n=512, tile_k=1024):
    """Pallas equivalent of MLPLayer.forward: act(x @ W.T + b).

    x:            (..., in_features)
    weight:       (out_features, in_features)   (PyTorch nn.Linear layout)
    bias:         (out_features,) or None
    activation:   None, "relu", or a JAX-traceable elementwise callable
    compute_dtype: None (exact, use x.dtype) or e.g. jnp.bfloat16 for the fast
                   MXU path (f32 accumulation is kept either way).
    """
    orig_shape = x.shape
    in_f = orig_shape[-1]
    x2 = x.reshape(-1, in_f)
    n = x2.shape[0]
    out_f, in_f_w = weight.shape
    assert in_f_w == in_f, "weight must be (out_features, in_features)"

    out_dtype = x.dtype
    cdtype = jnp.dtype(compute_dtype) if compute_dtype is not None else jnp.dtype(x.dtype)

    if callable(activation):
        act_fn = activation
    elif activation == "relu":
        act_fn = lambda t: jnp.maximum(t, 0.0)
    elif activation is None:
        act_fn = None
    else:
        raise ValueError(f"unsupported activation: {activation!r}")

    has_bias = bias is not None
    use_scratch = jnp.dtype(out_dtype) != jnp.dtype(jnp.float32)

    # One-time host-side layout/dtype prep (amortized over all tiles):
    #   W.T -> (in_f, out_f) so the kernel contraction needs no per-step transpose.
    x2 = x2.astype(cdtype)
    w_t = weight.T.astype(cdtype)

    in_item = jnp.dtype(cdtype).itemsize
    out_item = jnp.dtype(out_dtype).itemsize

    # --- VMEM budget (with headroom for Mosaic internal scratch) -------------
    try:
        vmem_cap = int(pltpu.get_tpu_info().vmem_capacity_bytes)
    except Exception:
        vmem_cap = 64 * 1024 * 1024          # conservative (v7x per-TC)
    vmem_budget = (vmem_cap * 3) // 4        # ~48 MiB on v7x, ~96 MiB on v5e/v6e

    # --- M / N tiles ----------------------------------------------------------
    m_align = max(8, 32 // in_item)          # 8 for f32, 16 for bf16 sublane packing
    tm = _pick_tile(n, tile_m, m_align)
    tn = _pick_tile(out_f, tile_n, 128)      # lane-dense output stores

    # v7x megacore: make sure the "parallel" axes expose >= 2 tiles when there
    # is enough work so both TensorCores participate.
    if pl.cdiv(n, tm) * pl.cdiv(out_f, tn) == 1 and n >= 2 * m_align:
        tm = _round_up(-(-n // 2), m_align)

    def footprint(tk_):
        need = 2 * (tm * tk_ + tk_ * tn) * in_item      # x, W double-buffered
        need += 2 * tm * tn * out_item                   # output double-buffered
        if has_bias:
            need += 2 * tn * 4
        if use_scratch:
            need += tm * tn * 4
        return need

    # --- K tile: bounded, 128-aligned, exact (divisor or zero-padding) -------
    if in_f <= tile_k:
        tk = in_f                                        # single K step, full dim
        pad_k = 0
    else:
        tk = max(128, (tile_k // 128) * 128)
        while tk > 128 and footprint(tk) > vmem_budget:  # shrink to fit VMEM budget
            tk -= 128
        tk_div, t = 0, tk
        while t >= 128:                                  # prefer an exact divisor
            if in_f % t == 0:
                tk_div = t
                break
            t -= 128
        if tk_div:
            tk, pad_k = tk_div, 0
        else:
            pad_k = _round_up(in_f, tk) - in_f           # zero-pad K instead of tk=in_f

    if pad_k:
        x2 = jnp.pad(x2, ((0, 0), (0, pad_k)))
        w_t = jnp.pad(w_t, ((0, pad_k), (0, 0)))
    k_total = in_f + pad_k

    grid = (pl.cdiv(n, tm), pl.cdiv(out_f, tn), k_total // tk)
    gm, gn = grid[0], grid[1]

    vmem_limit = int(min(vmem_budget, max(32 * 1024 * 1024, 2 * footprint(tk))))

    cost = pl.CostEstimate(
        flops=2 * n * in_f * out_f,
        transcendentals=0,
        bytes_accessed=(gn * n * k_total * in_item        # x re-read per N tile
                        + gm * k_total * out_f * in_item  # W re-read per M tile
                        + (out_f * 4 if has_bias else 0)
                        + n * out_f * out_item),
    )

    in_specs = [
        pl.BlockSpec((tm, tk), lambda i, j, k: (i, k)),   # x tile
        pl.BlockSpec((tk, tn), lambda i, j, k: (k, j)),   # W.T tile (in, out)
    ]
    args = [x2, w_t]
    if has_bias:
        in_specs.append(pl.BlockSpec((1, tn), lambda i, j, k: (0, j)))
        args.append(bias.astype(jnp.float32).reshape(1, out_f))

    scratch_shapes = [pltpu.VMEM((tm, tn), jnp.float32)] if use_scratch else []

    out = pl.pallas_call(
        _make_kernel(act_fn, has_bias, use_scratch),
        out_shape=jax.ShapeDtypeStruct((n, out_f), out_dtype),
        grid_spec=pltpu.PrefetchScalarGridSpec(
            num_scalar_prefetch=0,
            grid=grid,
            in_specs=in_specs,
            out_specs=pl.BlockSpec((tm, tn), lambda i, j, k: (i, j)),
            scratch_shapes=scratch_shapes,
        ),
        compiler_params=pltpu.CompilerParams(
            dimension_semantics=("parallel", "parallel", "arbitrary"),
            vmem_limit_bytes=vmem_limit,
        ),
        cost_estimate=cost,
    )(*args)
    return out.reshape(*orig_shape[:-1], out_f)


def _reference(x, weight, bias=None, apply_relu=True):
    y = jnp.dot(x, weight.T, precision=lax.Precision.HIGHEST)
    if bias is not None:
        y = y + bias
    return jnp.maximum(y, 0.0) if apply_relu else y


if __name__ == "__main__":
    key = jax.random.PRNGKey(0)
    k_x, k_w, k_b, k_x2, k_w2, k_b2, k_x3, k_w3 = jax.random.split(key, 8)

    # --- 1) Small shapes consistent with the module: N points, in=32, out=64 ---
    N, IN_F, OUT_F = 16, 32, 64
    x = jax.random.normal(k_x, (N, IN_F), dtype=jnp.float32)
    # Deterministic init matching the PyTorch __init__:
    #   xavier_normal_ on weight, normal_(0, 0.001) on bias
    xavier_std = math.sqrt(2.0 / (IN_F + OUT_F))
    weight = jax.random.normal(k_w, (OUT_F, IN_F), dtype=jnp.float32) * xavier_std
    bias = jax.random.normal(k_b, (OUT_F,), dtype=jnp.float32) * 0.001

    out = mlp_layer(x, weight, bias, activation="relu")
    jax.block_until_ready(out)
    assert out.shape == (N, OUT_F)
    assert jnp.allclose(out, _reference(x, weight, bias), atol=1e-4, rtol=1e-4)

    # --- 2) Multi-tile grid: multi-K accumulation, K zero-padding, megacore split
    N2, IN2, OUT2 = 512, 1344, 384          # 1344 has no 128-multiple divisor <= 1024
    x2 = jax.random.normal(k_x2, (N2, IN2), dtype=jnp.float32)
    std2 = math.sqrt(2.0 / (IN2 + OUT2))
    w2 = jax.random.normal(k_w2, (OUT2, IN2), dtype=jnp.float32) * std2
    b2 = jax.random.normal(k_b2, (OUT2,), dtype=jnp.float32) * 0.001

    out2 = mlp_layer(x2, w2, b2, activation="relu")
    jax.block_until_ready(out2)
    assert out2.shape == (N2, OUT2)
    assert jnp.allclose(out2, _reference(x2, w2, b2), atol=1e-3, rtol=1e-3)

    # --- 3) bf16 fast MXU path, no bias, no activation (precision tradeoff path)
    N3, IN3, OUT3 = 256, 128, 256
    x3 = jax.random.normal(k_x3, (N3, IN3), dtype=jnp.float32)
    std3 = math.sqrt(2.0 / (IN3 + OUT3))
    w3 = jax.random.normal(k_w3, (OUT3, IN3), dtype=jnp.float32) * std3

    out3 = mlp_layer(x3, w3, None, activation=None, compute_dtype=jnp.bfloat16)
    jax.block_until_ready(out3)
    ref3 = jnp.dot(x3.astype(jnp.bfloat16), w3.T.astype(jnp.bfloat16),
                   preferred_element_type=jnp.float32)
    assert out3.shape == (N3, OUT3)
    assert jnp.allclose(out3, ref3, atol=1e-3, rtol=1e-3)

    print("KERNEL_OK")
</pallas_src>

<mosaic_0001>
module attributes {stable_mosaic.version = 11 : i64} {
  func.func @kernel(%arg0: i32, %arg1: i32, %arg2: i32, %arg3: memref<8x32xf32, #tpu.memory_space<vmem>>, %arg4: memref<32x64xf32, #tpu.memory_space<vmem>>, %arg5: memref<1x64xf32, #tpu.memory_space<vmem>>, %arg6: memref<8x64xf32, #tpu.memory_space<vmem>>) attributes {dimension_semantics = [#tpu.dimension_semantics<parallel>, #tpu.dimension_semantics<parallel>, #tpu.dimension_semantics<arbitrary>], iteration_bounds = array<i64: 2, 1, 1>, scalar_prefetch = 0 : i64, scratch_operands = 0 : i64, tpu.core_type = #tpu.core_type<tc>, window_params = [{transform_indices = @transform_0, window_bounds = array<i64: 8, 32>}, {transform_indices = @transform_1, window_bounds = array<i64: 32, 64>}, {transform_indices = @transform_2, window_bounds = array<i64: 1, 64>}, {transform_indices = @transform_3, window_bounds = array<i64: 8, 64>}]} {
    %c0_i32 = arith.constant 0 : i32
    %0 = arith.cmpi eq, %arg2, %c0_i32 : i32
    %1 = arith.extui %0 : i1 to i32
    %c0_i32_0 = arith.constant 0 : i32
    %2 = arith.cmpi ne, %1, %c0_i32_0 : i32
    scf.if %2 {
      %cst_10 = arith.constant 0.000000e+00 : f32
      %12 = vector.broadcast %cst_10 : f32 to vector<8x64xf32>
      %c0_11 = arith.constant 0 : index
      %c0_12 = arith.constant 0 : index
      %13 = vector.load %arg6[%c0_11, %c0_12] : memref<8x64xf32, #tpu.memory_space<vmem>>, vector<8x64xf32>
      tpu.vector_store %arg6[%c0_11, %c0_12], %12 {strides = array<i32>} : memref<8x64xf32, #tpu.memory_space<vmem>>, vector<8x64xf32>,
    } else {
    }
    %c0 = arith.constant 0 : index
    %c0_1 = arith.constant 0 : index
    %3 = vector.load %arg6[%c0, %c0_1] : memref<8x64xf32, #tpu.memory_space<vmem>>, vector<8x64xf32>
    %c0_2 = arith.constant 0 : index
    %c0_3 = arith.constant 0 : index
    %4 = vector.load %arg3[%c0_2, %c0_3] : memref<8x32xf32, #tpu.memory_space<vmem>>, vector<8x32xf32>
    %c0_4 = arith.constant 0 : index
    %c0_5 = arith.constant 0 : index
    %5 = vector.load %arg4[%c0_4, %c0_5] : memref<32x64xf32, #tpu.memory_space<vmem>>, vector<32x64xf32>
    %cst = arith.constant dense<0.000000e+00> : vector<8x64xf32>
    %6 = tpu.matmul %4, %5, %cst {dimension_numbers = #tpu.dot_dimension_numbers<[1], [0], [0], [1], [0, 0, 1, 1], [], []>} : vector<8x32xf32>, vector<32x64xf32>, vector<8x64xf32> -> vector<8x64xf32>
    %7 = arith.addf %3, %6 : vector<8x64xf32>
    %c0_6 = arith.constant 0 : index
    %c0_7 = arith.constant 0 : index
    %8 = vector.load %arg6[%c0_6, %c0_7] : memref<8x64xf32, #tpu.memory_space<vmem>>, vector<8x64xf32>
    tpu.vector_store %arg6[%c0_6, %c0_7], %7 {strides = array<i32>} : memref<8x64xf32, #tpu.memory_space<vmem>>, vector<8x64xf32>,
    %c0_i32_8 = arith.constant 0 : i32
    %9 = arith.cmpi eq, %arg2, %c0_i32_8 : i32
    %10 = arith.extui %9 : i1 to i32
    %c0_i32_9 = arith.constant 0 : i32
    %11 = arith.cmpi ne, %10, %c0_i32_9 : i32
    scf.if %11 {
      %c0_10 = arith.constant 0 : index
      %c0_11 = arith.constant 0 : index
      %12 = vector.load %arg6[%c0_10, %c0_11] : memref<8x64xf32, #tpu.memory_space<vmem>>, vector<8x64xf32>
      %c0_12 = arith.constant 0 : index
      %c0_13 = arith.constant 0 : index
      %13 = vector.load %arg5[%c0_12, %c0_13] : memref<1x64xf32, #tpu.memory_space<vmem>>, vector<1x64xf32>
      %14 = vector.broadcast %13 : vector<1x64xf32> to vector<8x64xf32>
      %15 = arith.addf %12, %14 : vector<8x64xf32>
      %cst_14 = arith.constant 0.000000e+00 : f32
      %16 = vector.broadcast %cst_14 : f32 to vector<8x64xf32>
      %17 = arith.maximumf %15, %16 : vector<8x64xf32>
      %c0_15 = arith.constant 0 : index
      %c0_16 = arith.constant 0 : index
      %18 = vector.load %arg6[%c0_15, %c0_16] : memref<8x64xf32, #tpu.memory_space<vmem>>, vector<8x64xf32>
      tpu.vector_store %arg6[%c0_15, %c0_16], %17 {strides = array<i32>} : memref<8x64xf32, #tpu.memory_space<vmem>>, vector<8x64xf32>,
    } else {
    }
    return
  }
  func.func @transform_0(%arg0: i32, %arg1: i32, %arg2: i32) -> (i32, i32) {
    %c0_i32 = arith.constant 0 : i32
    return %arg0, %arg2 : i32, i32
  }
  func.func @transform_1(%arg0: i32, %arg1: i32, %arg2: i32) -> (i32, i32) {
    %c0_i32 = arith.constant 0 : i32
    return %arg2, %arg1 : i32, i32
  }
  func.func @transform_2(%arg0: i32, %arg1: i32, %arg2: i32) -> (i32, i32) {
    %c0_i32 = arith.constant 0 : i32
    %c0_i32_0 = arith.constant 0 : i32
    return %c0_i32, %arg1 : i32, i32
  }
  func.func @transform_3(%arg0: i32, %arg1: i32, %arg2: i32) -> (i32, i32) {
    %c0_i32 = arith.constant 0 : i32
    return %arg0, %arg1 : i32, i32
  }
}

</mosaic_0001>

<bundles_post_ra>
// kernel: tpu_custom_call.1
= control target key start
LH: loop header
LB: loop body
LE: loop exit
PB: predicated region body
PF: predicated region fallthrough
CT: control target
= control target key end

     0   :  { %8 = vsyncpa [#allocation3], 0  ;;  %s998_s0 = inlined_call_operand.hbm [shape: f32[16,32], index: 0, kind: input, shape index: {}]   ;;  %s999_s1 = inlined_call_operand.hbm [shape: f32[32,64], index: 1, kind: input, shape index: {}]   ;;  %s1000_s2 = inlined_call_operand.vmem [shape: f32[1,64], index: 2, kind: input, shape index: {}]   ;;  %s1001_s3 = inlined_call_operand.hbm [shape: f32[16,64], index: 3, kind: output, shape index: {}]  }
   0x1   :  { %10 = vsyncpa [#allocation3 + $0x1], 0 }
   0x2   :  { %11 = vsyncpa [#allocation6], 0 }
   0x3   :  { %12 = vsyncpa [#allocation4], 0 }
   0x4   :  { %14 = vsyncpa [#allocation4 + $0x1], 0  ;;  %s770_s12 = smov 0   ;;  %s772_s13 = smov 0  }
   0x5   :  { %s774_s14 = smov 0   ;;  %s776_s15 = smov 0  }
   0x6   :  { %s778_s16 = smov 0   ;;  %s780_s17 = smov 0  }
   0x7 LB: > { %s478_s18 = sadd.s32 4294967295, %s740_s17   ;;  %s479_s19 = sadd.s32 4294967294, %s740_s17   ;;  %s740_s17 = sphi %s780_s17, %s20_s17   ;;  %s736_s16 = sphi %s778_s16, %s1025_s16   ;;  %s732_s15 = sphi %s776_s15, %s1024_s15   ;;  %s728_s14 = sphi %s774_s14, %s1023_s14   ;;  %s724_s13 = sphi %s772_s13, %s1022_s13   ;;  %s720_s12 = sphi %s770_s12, %s1021_s12  }
   0x8   : > { %p61_p0 = scmp.ne.s32.totalorder %s724_s13, %s720_s12  ;;  %p804_p1 = scmp.eq.s32.totalorder %s478_s18, 0 }
   0x9   : > { %p808_p2 = scmp.eq.s32.totalorder %s478_s18, 1  ;;  %p147_p3 = scmp.eq.s32.totalorder %s479_s19, 1 }
   0xa   : > { %s1006_s20 = scalar_select %p804_p1, 1, 0 }
   0xb   : > { %s1007_s21 = scalar_select %p808_p2, 1, 0 }
   0xc   : > { %p814_p4 = por %p804_p1, %p61_p0  ;;  %p480_p5 = scmp.ge.s32.totalorder %s740_s17, 1 }
   0xd   : > { %p819_p6 = por %p147_p3, %p61_p0  ;;  %p154_p7 = scmp.lt.s32.totalorder %s740_s17, 3 }
   0xe   : > { %s1008_s22 = scalar_select %p814_p4, 1, 0 }
   0xf   : > { %s1009_s23 = scalar_select %p819_p6, 1, 0 }
  0x10   : > { %p824_p8 = pnand %p480_p5, %p154_p7  ;;  %s742_s25 = smov [#allocation5]  }
  0x11   : > { %s170_s26 = sshll.u32 %s742_s25, 4  ;;  %s39_s28 = sadd.s32 1, %s736_s16  ;;  %s171_s26 = int_to_ptr.vmem [resolvable:$true] %s170_s26 }
  0x12   : > { %s1010_s24 = scalar_select %p824_p8, 1, 0 }
  0x13   : > { %p526_p9 = pneg %p824_p8  ;;  %s596_s4 = scalar_lea.hbm %s999_s1, 512 }
  0x14   : > { %p597_p12 = scmp.ne.s32.totalorder %s999_s1, %s596_s4  ;;  %p603_p5 = scmp.lt.u32.totalorder %s596_s4, %s999_s1 }
  0x15   : > { %p833_p11 = pnand %p526_p9, %p804_p1 }
  0x17   : > { %p598_p13 = pneg %p833_p11 }
  0x19   : > { %p599_p0 = pnand %p598_p13, %p597_p12 }
  0x1b   : > { %p600_p3 = pneg %p599_p0 }
  0x1d   : > { %p605_p7 = pnand %p603_p5, %p600_p3 }
  0x1f   : > { %608 = shalt.err (!%p605_p7)
}
  0x20   : > { %s609_s9 = scalar_lea.vmem %s171_s26, 512  ;;  %p617_p1 = scmp.lt.s32.totalorder %s171_s26, %s171_s26 }
  0x21   : > { %p610_p9 = scmp.ne.s32.totalorder %s171_s26, %s609_s9  ;;  %p618_p4 = scmp.lt.s32.totalorder %s609_s9, %s609_s9 }
  0x23   : > { %p612_p10 = pnand %p610_p9, %p598_p13  ;;  %p619_p8 = por %p618_p4, %p617_p1 }
  0x25   : > { %p613_p6 = pneg %p612_p10 }
  0x27   : > { %p620_p2 = pnand %p619_p8, %p613_p6 }
  0x29   : > { %623 = shalt.err (!%p620_p2)
}
  0x2a   : > { %s743_s10 = smov 128   ;;  %s744_s11 = smov 8  }
  0x2b   : > { %529 = dma.hbm_to_vmem [thread:$0]  (!%p833_p11), %s999_s1, 512, %s171_s26, [#allocation6], %s743_s10, %s743_s10, %s744_s11  }
  0x2c   : > { %p41_p1 = scmp.ge.s32.totalorder %s39_s28, 2  ;;  %s48_s25 = sadd.s32 1, %s728_s14 }
  0x2d   : > { %p55_p2 = scmp.ne.s32.totalorder %s728_s14, %s724_s13  ;;  %p56_p4 = scmp.eq.s32.totalorder %s740_s17, 0 }
  0x2e   : > { %s1027_s28 = smov (%p41_p1, %s39_s28), 0  ;;  %p1013_p8 = scmp.ne.s32.totalorder %s1007_s21, 0 }
  0x2f   : > { %p860_p6 = por %p56_p4, %p55_p2  ;;  %s43_s27 = ssub.s32 %s736_s16, %s1027_s28 }
  0x30   : > { %p866_p10 = por %p1013_p8, %p55_p2  ;;  %p539_p12 = scmp.lt.s32.totalorder %s740_s17, 2 }
  0x31   : > { %p46_p11 = scmp.eq.s32.totalorder %s43_s27, 0  ;;  %s190_s26 = sand.u32 1, %s728_s14  }
  0x32   : > { %s484_s4 = sshll.u32 %s190_s26, 3  ;;  %s485_s6 = sshll.u32 %s736_s16, 7 }
  0x33   : > { %s875_s5 = scalar_select %p46_p11, %s728_s14, %s48_s25  }
  0x34   : > { %s881_s9 = scalar_lea.hbm %s998_s0, %s485_s6  ;;  %s194_s21 = scalar_lea.vmem [#allocation2], %s484_s4 }
  0x35   : > { %s202_s10 = sshll.u32 %s194_s21, 4  ;;  %p887_p13 = pnand %p539_p12, %p860_p6  ;;  %s883_s10 = int_to_ptr.vmem [resolvable:$true] %s202_s10 }
  0x36   : > { %s191_s18 = scalar_lea.sflag [#allocation3], %s190_s26  ;;  %s624_s19 = scalar_lea.hbm %s881_s9, 128 }
  0x37   : > { %p625_p0 = scmp.ne.s32.totalorder %s881_s9, %s624_s19  ;;  %p626_p3 = pneg %p887_p13 }
  0x38   : > { %s629_s4 = scalar_lea.hbm %s998_s0, 256  ;;  %p630_p9 = scmp.lt.u32.totalorder %s881_s9, %s998_s0 }
  0x39   : > { %p627_p5 = pnand %p626_p3, %p625_p0  ;;  %p631_p1 = scmp.lt.u32.totalorder %s629_s4, %s624_s19 }
  0x3a   : > { %p633_p4 = scmp.lt.u32.totalorder %s624_s19, %s881_s9 }
  0x3b   : > { %p628_p7 = pneg %p627_p5  ;;  %p632_p2 = por %p631_p1, %p630_p9 }
  0x3d   : > { %p634_p6 = por %p633_p4, %p632_p2 }
  0x3f   : > { %p635_p8 = pnand %p634_p6, %p628_p7 }
  0x41   : > { %638 = shalt.err (!%p635_p8)
}
  0x42   : > { %s639_s26 = scalar_lea.vmem %s883_s10, 128  ;;  %s745_s7 = smov [#allocation2]  }
  0x43   : > { %p640_p12 = scmp.ne.s32.totalorder %s883_s10, %s639_s26  ;;  %s644_s8 = sshll.u32 %s745_s7, 4  ;;  %s645_s8 = int_to_ptr.vmem [resolvable:$false] %s644_s8 }
  0x44   : > { %s646_s21 = scalar_lea.vmem %s645_s8, 256  ;;  %p647_p5 = scmp.lt.s32.totalorder %s883_s10, %s645_s8 }
  0x45   : > { %p642_p11 = pnand %p640_p12, %p626_p3  ;;  %p648_p9 = scmp.lt.s32.totalorder %s646_s21, %s639_s26 }
  0x47   : > { %p643_p0 = pneg %p642_p11  ;;  %p649_p1 = por %p648_p9, %p647_p5 }
  0x49   : > { %p650_p2 = pnand %p649_p1, %p643_p0 }
  0x4b   : > { %653 = shalt.err (!%p650_p2)
}
  0x4c   : > { %533 = dma.hbm_to_vmem [thread:$0]  (!%p887_p13), %s881_s9, 128, %s883_s10, %s191_s18  }
  0x4d   : > { %p1016_p7 = scmp.ne.s32.totalorder %s1010_s24, 0 }
  0x4e   : > { %s919_s19 = sand.u32 (!%p1016_p7), 1, %s724_s13   ;;  %p1017_p3 = scmp.ne.s32.totalorder (!%p1016_p7), %s1008_s22, 0 }
  0x4f   : > { %211 = sbr.rel (%p1016_p7) target bundleno = 341 (0x155), region = 32  ;;  %s487_s25 = sshll.u32 (!%p1016_p7), %s919_s19, 3 }
  0x50   : > { %s214_s27 = scalar_lea.sflag (!%p1016_p7), [#allocation3], %s919_s19  ;;  %s217_s4 = scalar_lea.vmem (!%p1016_p7), [#allocation2], %s487_s25 }
  0x56   : > { %707 = dma.done.wait (%p1017_p3), %s214_s27, 128  }
  0x57   : > { %709 = vsyncadd (%p1017_p3), %s214_s27, 4294967168  ;;  %p1018_p4 = scmp.ne.s32.totalorder %s1006_s20, 0 }
  0x59   : > { %711 = dma.done.wait (%p1018_p4), [#allocation6], 512  }
  0x5a   : > { %713 = vsyncadd (%p1018_p4), [#allocation6], 4294966784  ;;  %vm255_vm0 = vcmask 523264   ;;  %v746_v0 = vmov 0.0|0.0   ;;  %s931_s24 = scalar_lea.vmem [#allocation7], %s487_s25  ;;  %v747_v1 = vmov 0.0  }
  0x5b   : > { %512 = vmatprep.subr.bf16.mxu0 %v746_v0  ;;  %256 = vst.msk [vmem:[%s931_s24] sm:$0xff] %vm255_vm0, %v747_v1  ;;  %vm748_vm1 = vmmov 0   ;;  %v259_v2 = vld [vmem:[#allocation5] sm:$0xff]  ;;  %v260_v3 = vld [vmem:[#allocation5 + $0x8] sm:$0xff]  ;;  %v261_v4 = vld [vmem:[#allocation5 + $0x10] sm:$0xff]  ;;  %vm263_vm2 = vcmask 261120  }
  0x5c   : > { %509 = vmatprep.mubr.msk.f32.mxu0 %vm748_vm1, %v747_v1  ;;  %v513_v5 = vpack.c.bf16 %v260_v3, %v259_v2  ;;  %v262_v6 = vld [vmem:[#allocation5 + $0x18] sm:$0xff]  ;;  %v491_v13 = vld [vmem:[%s1000_s2] ss:$0 sm:$0xff]  ;;  %s493_s9 = sshll.u32 %s732_s15, 7  ;;  %s369_s10 = sshll.u32 %s931_s24, 4  ;;  %s949_s10 = int_to_ptr.vmem [resolvable:$true] %s369_s10 }
  0x5d   : > { %v516_v7 = vpack.c.bf16 %v262_v6, %v261_v4  ;;  %v258_v8 = vld [vmem:[%s217_s4] sm:$0xff]  ;;  %s947_s29 = scalar_lea.hbm %s1001_s3, %s493_s9  ;;  %s355_s6 = scalar_lea.sflag [#allocation4], %s919_s19 }
  0x5e   : > { %514 = vmatpush3.bf16.msra.mxu0 %v513_v5  ;;  %s654_s26 = scalar_lea.vmem %s949_s10, 128  ;;  %s749_s15 = smov [#allocation7]  }
  0x5f   : > { %515 = vmatprep.subr.bf16.mxu0 %v746_v0  ;;  %p655_p13 = scmp.ne.s32.totalorder %s949_s10, %s654_s26  ;;  %s658_s7 = sshll.u32 %s749_s15, 4  ;;  %s659_s7 = int_to_ptr.vmem [resolvable:$false] %s658_s7 }
  0x60   : > { %s660_s8 = scalar_lea.vmem %s659_s7, 256  ;;  %p661_p12 = scmp.lt.s32.totalorder %s949_s10, %s659_s7 }
  0x61   : > { %p656_p6 = pnand %p655_p13, %p866_p10  ;;  %p662_p11 = scmp.lt.s32.totalorder %s660_s8, %s654_s26 }
  0x62   : > { %517 = vmatpush3.bf16.msra.mxu0 %v516_v7  ;;  %v257_v9 = vld [vmem:[%s931_s24] sm:$0xff] }
  0x63   : > { %p657_p8 = pneg %p656_p6  ;;  %p663_p0 = por %p662_p11, %p661_p12 }
  0x65   : > { %510 = vmatmul.mubr.msk.f32.vlgmr.msra.gmra.mrb[0].mxu0 %vm263_vm2, %v258_v8  ;;  %p664_p5 = pnand %p663_p0, %p657_p8 }
 0x138   : > { %v333_v10 = vpop.f32.mrb[0].mxu0 }
 0x139   : > { %v337_v11 = vadd.f32 %v333_v10, %v257_v9  ;;  %v511_v12 = vpop.f32.mrb[1].mxu0 }
 0x13b   : > { %339 = vst.msk [vmem:[%s931_s24] sm:$0xff] %vm255_vm0, %v337_v11 }
 0x142   : > { %v343_v14 = vld [vmem:[%s931_s24] sm:$0xff] }
 0x143   : > { %v351_v15 = vadd.f32 %v491_v13, %v343_v14 }
 0x145   : > { %v352_v16 = vmax.f32 %v351_v15, 0.0 }
 0x147   : > { %353 = vst.msk [vmem:[%s931_s24] sm:$0xff] %vm255_vm0, %v352_v16 }
 0x148   : > { %667 = shalt.err (!%p664_p5)
}
 0x149   : > { %s668_s21 = scalar_lea.hbm %s947_s29, 128  ;;  %s672_s27 = scalar_lea.hbm %s1001_s3, 256 }
 0x14a   : > { %p669_p9 = scmp.ne.s32.totalorder %s947_s29, %s668_s21  ;;  %p673_p7 = scmp.lt.u32.totalorder %s947_s29, %s1001_s3 }
 0x14b   : > { %p674_p3 = scmp.lt.u32.totalorder %s672_s27, %s668_s21  ;;  %p676_p13 = scmp.lt.u32.totalorder %s668_s21, %s947_s29 }
 0x14c   : > { %p670_p1 = pnand %p669_p9, %p866_p10 }
 0x14d   : > { %p675_p4 = por %p674_p3, %p673_p7 }
 0x14e   : > { %p671_p2 = pneg %p670_p1 }
 0x14f   : > { %p677_p6 = por %p676_p13, %p675_p4 }
 0x151   : > { %p678_p8 = pnand %p677_p6, %p671_p2 }
 0x153   : > { %681 = shalt.err (!%p678_p8)
}
 0x154   : > { %524 = dma.vmem_to_hbm [thread:$0]  (%p866_p10), %s949_s10, 128, %s947_s29, %s355_s6  }
 0x155 PF: > { %s381_s20 = sand.u32 1, %s720_s12   ;;  %p1019_p12 = scmp.ne.s32.totalorder %s1009_s23, 0 }
 0x156   : > { %p1020_p11 = scmp.ge.s32.totalorder %s740_s17, 2  ;;  %s382_s22 = scalar_lea.sflag [#allocation4], %s381_s20 }
 0x158   : > { %p535_p0 = pnand %p1020_p11, %p1019_p12 }
 0x15a   : > { %715 = dma.done.wait (!%p535_p0), %s382_s22, 128  }
 0x15b   : > { %717 = vsyncadd (!%p535_p0), %s382_s22, 4294967168  ;;  %s20_s17 = sadd.s32 1, %s740_s17   ;;  %s1021_s12 = smov %s724_s13 }
 0x15c   : > { %p17_p5 = scmp.ge.s32.totalorder %s20_s17, 4   ;;  %s1022_s13 = smov %s728_s14 }
 0x15d   : > { %s1023_s14 = smov %s875_s5  ;;  %s1024_s15 = smov %s736_s16 }
 0x15e   : > { %s1025_s16 = smov %s1027_s28  ;;  %19 = sbr.rel (!%p17_p5) target bundleno = 7 (0x7), region = 93 }
 0x165   :  { %387 = vsyncpa [#allocation3], 1 }
 0x166   :  { %389 = vsyncpa [#allocation3 + $0x1], 1 }
 0x167   :  { %390 = vsyncpa [#allocation6], 1 }
 0x168   :  { %391 = vsyncpa [#allocation4], 1 }
 0x169   :  { %393 = vsyncpa [#allocation4 + $0x1], 1 }

</bundles_post_ra>
